<compile_context>
chip_gen: v7x
topology: tpu7x:2x2x1
jax: 0.10.0
libtpu: 0.0.40
codegen_flags: <defaults>
</compile_context>

<pallas_src>
import jax
import jax.numpy as jnp
from jax.experimental import pallas as pl
from jax.experimental.pallas import tpu as pltpu


# -----------------------------------------------------------------------------
# Kernel: one batch tile of   y = ReLU(x @ W1 + b1) @ W2 + b2
# -----------------------------------------------------------------------------
def miner_kernel(x_ref, w1_ref, b1_ref, w2_ref, b2_ref, o_ref):
    x = x_ref[...]                                                    # (TM, D) f32
    h = jnp.dot(x.astype(jnp.bfloat16), w1_ref[...],                  # MXU, bf16 in
                preferred_element_type=jnp.float32)                   # f32 acc
    h = jnp.maximum(h + b1_ref[...], 0.0)                             # bias + ReLU (f32, VPU)
    y = jnp.dot(h.astype(jnp.bfloat16), w2_ref[...],                  # MXU, bf16 in
                preferred_element_type=jnp.float32)
    o_ref[...] = y + b2_ref[...]                                      # f32 out


def _round_up(x, m):
    return ((x + m - 1) // m) * m


def _choose_tm(n_rows):
    """Batch-tile rows per grid step.

    Small batches: one fat step covering everything (no padding-only steps,
    half the per-step overhead).  Large batches: 512-row tiles (close to HBM
    roofline, fits default scoped VMEM on v5e/v6e/v7x with bf16 weights).
    """
    if n_rows <= 512:
        return max(8, _round_up(n_rows, 8))
    return 512


def miner_transform(x, w1_bf16, b1, w2_bf16, b2):
    """Apply Linear->ReLU->Linear to x of shape (N, D).

    Weight layout: w* are (D_in, D_out) so y = x @ w + b (PyTorch's W^T),
    stored/passed as bf16.  Biases are f32.
    """
    N, D = x.shape
    assert D % 128 == 0, "code_dim must be a multiple of 128 for lane-dense tiles"
    # TODO(synk): for code_dim not a multiple of 128, pad D (x cols + weight
    #             rows/cols + biases) in the wrapper; not needed here.

    tm = _choose_tm(N)
    grid = pl.cdiv(N, tm)
    # Only shard the batch axis across TensorCores (v7x) when each core gets
    # enough rows that compute beats re-streaming the weights.
    semantics = ("parallel",) if N >= 1024 else ("arbitrary",)

    b1_r = b1.reshape(1, D).astype(jnp.float32)
    b2_r = b2.reshape(1, D).astype(jnp.float32)

    resident = pl.Buffered(1)  # constant-index_map weights: single-buffer

    out = pl.pallas_call(
        miner_kernel,
        out_shape=jax.ShapeDtypeStruct((N, D), jnp.float32),
        grid_spec=pltpu.PrefetchScalarGridSpec(
            num_scalar_prefetch=0,
            grid=(grid,),
            in_specs=[
                pl.BlockSpec((tm, D), lambda i: (i, 0)),                           # x tile
                pl.BlockSpec((D, D), lambda i: (0, 0), pipeline_mode=resident),    # w1 (resident, bf16)
                pl.BlockSpec((1, D), lambda i: (0, 0)),                            # b1
                pl.BlockSpec((D, D), lambda i: (0, 0), pipeline_mode=resident),    # w2 (resident, bf16)
                pl.BlockSpec((1, D), lambda i: (0, 0)),                            # b2
            ],
            out_specs=pl.BlockSpec((tm, D), lambda i: (i, 0)),
        ),
        compiler_params=pltpu.CompilerParams(
            dimension_semantics=semantics,
        ),
    )(x, w1_bf16, b1_r, w2_bf16, b2_r)

    return out


def miner_forward(inputs, params):
    """Miner.forward: accepts a single (N, D) array or a list/tuple of them;
    returns a list of transformed arrays.

    All list elements are concatenated along rows and run through a single
    pallas_call so the weight matrices are streamed from HBM only once.
    """
    if not isinstance(inputs, (list, tuple)):
        inputs = [inputs]
    w1, b1, w2, b2 = params
    # bf16 weights: halves weight HBM traffic (done once here; ideally params
    # would already be stored in bf16).
    w1_bf16 = w1.astype(jnp.bfloat16)
    w2_bf16 = w2.astype(jnp.bfloat16)

    sizes = [int(x.shape[0]) for x in inputs]
    x_all = inputs[0] if len(inputs) == 1 else jnp.concatenate(inputs, axis=0)

    out_all = miner_transform(x_all, w1_bf16, b1, w2_bf16, b2)

    outs, off = [], 0
    for n in sizes:
        outs.append(out_all[off:off + n])
        off += n
    return outs


# -----------------------------------------------------------------------------
# Pure-JAX reference (numerics matched: bf16 matmul inputs, f32 accumulation)
# -----------------------------------------------------------------------------
def _reference_transform(x, w1, b1, w2, b2):
    h = jnp.dot(x.astype(jnp.bfloat16), w1.astype(jnp.bfloat16),
                preferred_element_type=jnp.float32) + b1[None, :]
    h = jnp.maximum(h, 0.0)
    y = jnp.dot(h.astype(jnp.bfloat16), w2.astype(jnp.bfloat16),
                preferred_element_type=jnp.float32) + b2[None, :]
    return y


if __name__ == "__main__":
    D = 256          # code_dim (module default is 512; small multiple of 128 here)
    N0, N1 = 16, 5   # two list elements; second exercises a partial last block

    key = jax.random.PRNGKey(0)
    k_x0, k_x1, k_w1, k_b1, k_w2, k_b2 = jax.random.split(key, 6)

    x0 = jax.random.normal(k_x0, (N0, D), dtype=jnp.float32)
    x1 = jax.random.normal(k_x1, (N1, D), dtype=jnp.float32)

    # Linear params, y = x @ w + b (w is (D_in, D_out)); kaiming-ish scale.
    w1 = jax.random.normal(k_w1, (D, D), dtype=jnp.float32) * (1.0 / jnp.sqrt(D))
    b1 = jax.random.normal(k_b1, (D,), dtype=jnp.float32) * 0.01
    w2 = jax.random.normal(k_w2, (D, D), dtype=jnp.float32) * (1.0 / jnp.sqrt(D))
    b2 = jax.random.normal(k_b2, (D,), dtype=jnp.float32) * 0.01

    params = (w1, b1, w2, b2)

    # List input path (single pallas_call over the concatenated batch).
    outs = jax.block_until_ready(miner_forward([x0, x1], params))
    refs = [_reference_transform(x0, *params), _reference_transform(x1, *params)]

    assert isinstance(outs, list) and len(outs) == 2
    assert outs[0].shape == (N0, D) and outs[1].shape == (N1, D)
    for o, r in zip(outs, refs):
        assert jnp.allclose(o, r, atol=2e-2, rtol=2e-2), "Pallas Miner mismatch vs reference"

    # Single-tensor (non-list) input path.
    out_single = jax.block_until_ready(miner_forward(x0, params))
    assert isinstance(out_single, list) and len(out_single) == 1
    assert jnp.allclose(out_single[0], refs[0], atol=2e-2, rtol=2e-2)

    print("KERNEL_OK")
</pallas_src>

<mosaic_0001>
module attributes {stable_mosaic.version = 11 : i64} {
  func.func @miner_kernel(%arg0: i32, %arg1: memref<24x256xf32, #tpu.memory_space<vmem>>, %arg2: memref<256x256xbf16, #tpu.memory_space<vmem>>, %arg3: memref<1x256xf32, #tpu.memory_space<vmem>>, %arg4: memref<256x256xbf16, #tpu.memory_space<vmem>>, %arg5: memref<1x256xf32, #tpu.memory_space<vmem>>, %arg6: memref<24x256xf32, #tpu.memory_space<vmem>>) attributes {dimension_semantics = [#tpu.dimension_semantics<arbitrary>], iteration_bounds = array<i64: 1>, scalar_prefetch = 0 : i64, scratch_operands = 0 : i64, tpu.core_type = #tpu.core_type<tc>, window_params = [{transform_indices = @transform_0, window_bounds = array<i64: 24, 256>}, {pipeline_mode = #tpu.pipeline_mode<synchronous>, transform_indices = @transform_1, window_bounds = array<i64: 256, 256>}, {pipeline_mode = #tpu.pipeline_mode<synchronous>, transform_indices = @transform_2, window_bounds = array<i64: 1, 256>}, {pipeline_mode = #tpu.pipeline_mode<synchronous>, transform_indices = @transform_3, window_bounds = array<i64: 256, 256>}, {pipeline_mode = #tpu.pipeline_mode<synchronous>, transform_indices = @transform_4, window_bounds = array<i64: 1, 256>}, {transform_indices = @transform_5, window_bounds = array<i64: 24, 256>}]} {
    %c0 = arith.constant 0 : index
    %c0_0 = arith.constant 0 : index
    %0 = vector.load %arg1[%c0, %c0_0] : memref<24x256xf32, #tpu.memory_space<vmem>>, vector<24x256xf32>
    %1 = arith.truncf %0 : vector<24x256xf32> to vector<24x256xbf16>
    %c0_1 = arith.constant 0 : index
    %c0_2 = arith.constant 0 : index
    %2 = vector.load %arg2[%c0_1, %c0_2] : memref<256x256xbf16, #tpu.memory_space<vmem>>, vector<256x256xbf16>
    %cst = arith.constant dense<0.000000e+00> : vector<24x256xf32>
    %3 = tpu.matmul %1, %2, %cst {dimension_numbers = #tpu.dot_dimension_numbers<[1], [0], [0], [1], [0, 0, 1, 1], [], []>} : vector<24x256xbf16>, vector<256x256xbf16>, vector<24x256xf32> -> vector<24x256xf32>
    %c0_3 = arith.constant 0 : index
    %c0_4 = arith.constant 0 : index
    %4 = vector.load %arg3[%c0_3, %c0_4] : memref<1x256xf32, #tpu.memory_space<vmem>>, vector<1x256xf32>
    %5 = vector.broadcast %4 : vector<1x256xf32> to vector<24x256xf32>
    %6 = arith.addf %3, %5 : vector<24x256xf32>
    %cst_5 = arith.constant 0.000000e+00 : f32
    %7 = vector.broadcast %cst_5 : f32 to vector<24x256xf32>
    %8 = arith.maximumf %6, %7 : vector<24x256xf32>
    %9 = arith.truncf %8 : vector<24x256xf32> to vector<24x256xbf16>
    %c0_6 = arith.constant 0 : index
    %c0_7 = arith.constant 0 : index
    %10 = vector.load %arg4[%c0_6, %c0_7] : memref<256x256xbf16, #tpu.memory_space<vmem>>, vector<256x256xbf16>
    %cst_8 = arith.constant dense<0.000000e+00> : vector<24x256xf32>
    %11 = tpu.matmul %9, %10, %cst_8 {dimension_numbers = #tpu.dot_dimension_numbers<[1], [0], [0], [1], [0, 0, 1, 1], [], []>} : vector<24x256xbf16>, vector<256x256xbf16>, vector<24x256xf32> -> vector<24x256xf32>
    %c0_9 = arith.constant 0 : index
    %c0_10 = arith.constant 0 : index
    %12 = vector.load %arg5[%c0_9, %c0_10] : memref<1x256xf32, #tpu.memory_space<vmem>>, vector<1x256xf32>
    %13 = vector.broadcast %12 : vector<1x256xf32> to vector<24x256xf32>
    %14 = arith.addf %11, %13 : vector<24x256xf32>
    %c0_11 = arith.constant 0 : index
    %c0_12 = arith.constant 0 : index
    %15 = vector.load %arg6[%c0_11, %c0_12] : memref<24x256xf32, #tpu.memory_space<vmem>>, vector<24x256xf32>
    tpu.vector_store %arg6[%c0_11, %c0_12], %14 {strides = array<i32>} : memref<24x256xf32, #tpu.memory_space<vmem>>, vector<24x256xf32>,
    return
  }
  func.func @transform_0(%arg0: i32) -> (i32, i32) {
    %c0_i32 = arith.constant 0 : i32
    %c0_i32_0 = arith.constant 0 : i32
    return %arg0, %c0_i32 : i32, i32
  }
  func.func @transform_1(%arg0: i32) -> (i32, i32) {
    %c0_i32 = arith.constant 0 : i32
    %c0_i32_0 = arith.constant 0 : i32
    %c0_i32_1 = arith.constant 0 : i32
    return %c0_i32, %c0_i32_0 : i32, i32
  }
  func.func @transform_2(%arg0: i32) -> (i32, i32) {
    %c0_i32 = arith.constant 0 : i32
    %c0_i32_0 = arith.constant 0 : i32
    %c0_i32_1 = arith.constant 0 : i32
    return %c0_i32, %c0_i32_0 : i32, i32
  }
  func.func @transform_3(%arg0: i32) -> (i32, i32) {
    %c0_i32 = arith.constant 0 : i32
    %c0_i32_0 = arith.constant 0 : i32
    %c0_i32_1 = arith.constant 0 : i32
    return %c0_i32, %c0_i32_0 : i32, i32
  }
  func.func @transform_4(%arg0: i32) -> (i32, i32) {
    %c0_i32 = arith.constant 0 : i32
    %c0_i32_0 = arith.constant 0 : i32
    %c0_i32_1 = arith.constant 0 : i32
    return %c0_i32, %c0_i32_0 : i32, i32
  }
  func.func @transform_5(%arg0: i32) -> (i32, i32) {
    %c0_i32 = arith.constant 0 : i32
    %c0_i32_0 = arith.constant 0 : i32
    return %arg0, %c0_i32 : i32, i32
  }
}

</mosaic_0001>

<bundles_post_ra>
// kernel: tpu_custom_call.1
= control target key start
LH: loop header
LB: loop body
LE: loop exit
PB: predicated region body
PF: predicated region fallthrough
CT: control target
= control target key end

     0   :  { %10 = vsyncpa [#allocation3], 0  ;;  %s982_s0 = inlined_call_operand.hbm [shape: f32[21,256], index: 0, kind: input, shape index: {}]   ;;  %s983_s1 = inlined_call_operand.hbm [shape: bf16[256,256], index: 1, kind: input, shape index: {}]   ;;  %s984_s2 = inlined_call_operand.vmem [shape: f32[1,256], index: 2, kind: input, shape index: {}]   ;;  %s985_s3 = inlined_call_operand.hbm [shape: bf16[256,256], index: 3, kind: input, shape index: {}]   ;;  %s986_s4 = inlined_call_operand.vmem [shape: f32[1,256], index: 4, kind: input, shape index: {}]   ;;  %s987_s5 = inlined_call_operand.hbm [shape: f32[21,256], index: 5, kind: output, shape index: {}]  }
   0x1   :  { %11 = vsyncpa [#allocation6], 0 }
   0x2   :  { %12 = vsyncpa [#allocation4], 0  ;;  %s878_s18 = smov [#allocation5]   ;;  %s784_s22 = scalar_lea.hbm %s983_s1, 4096 }
   0x3   :  { %s30_s19 = sshll.u32 %s878_s18, 4  ;;  %p785_p0 = scmp.ne.s32.totalorder %s983_s1, %s784_s22  ;;  %s31_s19 = int_to_ptr.vmem [resolvable:$true] %s30_s19 }
   0x4   :  { %p788_p1 = scmp.lt.u32.totalorder %s784_s22, %s983_s1 }
   0x6   :  { %p790_p2 = pnand %p788_p1, %p785_p0 }
   0x8   :  { %793 = shalt.err (!%p790_p2)
}
   0x9   :  { %s794_s27 = scalar_lea.vmem %s31_s19, 4096  ;;  %p799_p4 = scmp.lt.s32.totalorder %s31_s19, %s31_s19 }
   0xa   :  { %p795_p3 = scmp.ne.s32.totalorder %s31_s19, %s794_s27  ;;  %p800_p5 = scmp.lt.s32.totalorder %s794_s27, %s794_s27 }
   0xc   :  { %p801_p6 = por %p800_p5, %p799_p4 }
   0xe   :  { %p802_p7 = pnand %p801_p6, %p795_p3 }
  0x10   :  { %805 = shalt.err (!%p802_p7)
}
  0x11   :  { %s879_s28 = smov 128   ;;  %s880_s29 = smov 8  }
  0x12   :  { %36 = dma.hbm_to_vmem [thread:$0]  %s983_s1, 4096, %s31_s19, [#allocation6], %s879_s28, %s879_s28, %s880_s29  }
  0x13   :  { %s881_s7 = smov [#allocation2]   ;;  %s806_s11 = scalar_lea.hbm %s982_s0, 768 }
  0x14   :  { %s18_s8 = sshll.u32 %s881_s7, 4  ;;  %p807_p8 = scmp.ne.s32.totalorder %s982_s0, %s806_s11  ;;  %s19_s8 = int_to_ptr.vmem [resolvable:$true] %s18_s8 }
  0x15   :  { %p810_p9 = scmp.lt.u32.totalorder %s806_s11, %s982_s0 }
  0x17   :  { %p812_p10 = pnand %p810_p9, %p807_p8 }
  0x19   :  { %815 = shalt.err (!%p812_p10)
}
  0x1a   :  { %s816_s16 = scalar_lea.vmem %s19_s8, 768  ;;  %p821_p12 = scmp.lt.s32.totalorder %s19_s8, %s19_s8 }
  0x1b   :  { %p817_p11 = scmp.ne.s32.totalorder %s19_s8, %s816_s16  ;;  %p822_p13 = scmp.lt.s32.totalorder %s816_s16, %s816_s16 }
  0x1d   :  { %p823_p0 = por %p822_p13, %p821_p12 }
  0x1f   :  { %p824_p1 = pnand %p823_p0, %p817_p11 }
  0x21   :  { %827 = shalt.err (!%p824_p1)
}
  0x22   :  { %s882_s1 = smov 256   ;;  %s883_s17 = smov 16  }
  0x23   :  { %24 = dma.hbm_to_vmem [thread:$0]  %s982_s0, 768, %s19_s8, [#allocation3], %s882_s1, %s882_s1, %s883_s17  }
  0x24   :  { %s884_s20 = smov [#allocation7]   ;;  %s828_s24 = scalar_lea.hbm %s985_s3, 4096 }
  0x25   :  { %s44_s21 = sshll.u32 %s884_s20, 4  ;;  %p829_p2 = scmp.ne.s32.totalorder %s985_s3, %s828_s24  ;;  %s45_s21 = int_to_ptr.vmem [resolvable:$true] %s44_s21 }
  0x26   :  { %p832_p3 = scmp.lt.u32.totalorder %s828_s24, %s985_s3 }
  0x28   :  { %p834_p4 = pnand %p832_p3, %p829_p2 }
  0x2a   :  { %837 = shalt.err (!%p834_p4)
}
  0x2b   :  { %s838_s6 = scalar_lea.vmem %s45_s21, 4096  ;;  %p843_p6 = scmp.lt.s32.totalorder %s45_s21, %s45_s21 }
  0x2c   :  { %p839_p5 = scmp.ne.s32.totalorder %s45_s21, %s838_s6  ;;  %p844_p7 = scmp.lt.s32.totalorder %s838_s6, %s838_s6 }
  0x2e   :  { %p845_p8 = por %p844_p7, %p843_p6 }
  0x30   :  { %p846_p9 = pnand %p845_p8, %p839_p5 }
  0x32   :  { %849 = shalt.err (!%p846_p9)
}
  0x33   :  { %50 = dma.hbm_to_vmem [thread:$0]  %s985_s3, 4096, %s45_s21, [#allocation6], %s879_s28, %s879_s28, %s880_s29  }
  0x34   :  { %872 = dma.done.wait [#allocation3], 768  }
  0x35   :  { %873 = vsyncadd [#allocation3], 4294966528 }
  0x36   :  { %874 = dma.done.wait [#allocation6], 8192  }
  0x37   :  { %875 = vsyncadd [#allocation6], 4294959104  ;;  %v688_v0 = vld [vmem:[#allocation5 + $0x4] ss:$8 sps:$4 sm:$0xff]   ;;  %v690_v1 = vld [vmem:[#allocation5] ss:$8 sps:$4 sm:$0xff]  }
  0x38   :  { %276 = vmatprep.subr.bf16.mxu0 %v688_v0  ;;  %v691_v2 = vld [vmem:[#allocation5 + $0x14] ss:$8 sps:$4 sm:$0xff]   ;;  %v693_v3 = vld [vmem:[#allocation5 + $0x10] ss:$8 sps:$4 sm:$0xff]   ;;  %v694_v4 = vld [vmem:[#allocation5 + $0x24] ss:$8 sps:$4 sm:$0xff]  }
  0x39   :  { %277 = vmatpush1.bf16.msra.mxu0 %v690_v1  ;;  %v696_v5 = vld [vmem:[#allocation5 + $0x20] ss:$8 sps:$4 sm:$0xff]   ;;  %v697_v6 = vld [vmem:[#allocation5 + $0x34] ss:$8 sps:$4 sm:$0xff]   ;;  %v699_v7 = vld [vmem:[#allocation5 + $0x30] ss:$8 sps:$4 sm:$0xff]  }
  0x3a   :  { %278 = vmatprep.subr.bf16.mxu0 %v691_v2  ;;  %v700_v8 = vld [vmem:[#allocation5 + $0x44] ss:$8 sps:$4 sm:$0xff]   ;;  %v702_v9 = vld [vmem:[#allocation5 + $0x40] ss:$8 sps:$4 sm:$0xff]   ;;  %v703_v10 = vld [vmem:[#allocation5 + $0x54] ss:$8 sps:$4 sm:$0xff]  }
  0x3b   :  { %v705_v11 = vld [vmem:[#allocation5 + $0x50] ss:$8 sps:$4 sm:$0xff]   ;;  %v706_v12 = vld [vmem:[#allocation5 + $0x64] ss:$8 sps:$4 sm:$0xff]   ;;  %v708_v15 = vld [vmem:[#allocation5 + $0x60] ss:$8 sps:$4 sm:$0xff]  }
  0x3c   :  { %v63_v13 = vld [vmem:[#allocation2 + $0x8] sm:$0xff]  ;;  %v65_v14 = vld [vmem:[#allocation2 + $0x18] sm:$0xff]  ;;  %v62_v54 = vld [vmem:[#allocation2] sm:$0xff]  ;;  %s885_s8 = smov [#allocation8]  }
  0x3d   :  { %279 = vmatpush1.bf16.msra.mxu0 %v693_v3  ;;  %v69_v16 = vpack.c.bf16 %v65_v14, %v63_v13  ;;  %v709_v17 = vld [vmem:[#allocation5 + $0x74] ss:$8 sps:$4 sm:$0xff]   ;;  %v736_v18 = vld [vmem:[#allocation7 + $0x4] ss:$8 sps:$4 sm:$0xff]   ;;  %v738_v19 = vld [vmem:[#allocation7] ss:$8 sps:$4 sm:$0xff]  }
  0x3e   :  { %280 = vmatprep.subr.bf16.mxu0 %v694_v4  ;;  %v739_v20 = vld [vmem:[#allocation7 + $0x14] ss:$8 sps:$4 sm:$0xff]   ;;  %v711_v21 = vld [vmem:[#allocation5 + $0x70] ss:$8 sps:$4 sm:$0xff]   ;;  %541 = vmatprep.subr.bf16.mxu1 %v736_v18  ;;  %v712_v23 = vld [vmem:[#allocation5 + $0x84] ss:$8 sps:$4 sm:$0xff]  }
  0x3f   :  { %308 = vmatprep.mubr.bf16.mxu0 %v69_v16  ;;  %542 = vmatpush1.bf16.msra.mxu1 %v738_v19  ;;  %v741_v22 = vld [vmem:[#allocation7 + $0x10] ss:$8 sps:$4 sm:$0xff]   ;;  %v742_v24 = vld [vmem:[#allocation7 + $0x24] ss:$8 sps:$4 sm:$0xff]   ;;  %v714_v25 = vld [vmem:[#allocation5 + $0x80] ss:$8 sps:$4 sm:$0xff]  }
  0x40   :  { %543 = vmatprep.subr.bf16.mxu1 %v739_v20  ;;  %v744_v26 = vld [vmem:[#allocation7 + $0x20] ss:$8 sps:$4 sm:$0xff]   ;;  %v715_v27 = vld [vmem:[#allocation5 + $0x94] ss:$8 sps:$4 sm:$0xff]   ;;  %v717_v29 = vld [vmem:[#allocation5 + $0x90] ss:$8 sps:$4 sm:$0xff]  }
  0x41   :  { %281 = vmatpush1.bf16.msra.mxu0 %v696_v5  ;;  %v745_v28 = vld [vmem:[#allocation7 + $0x34] ss:$8 sps:$4 sm:$0xff]   ;;  %v747_v30 = vld [vmem:[#allocation7 + $0x30] ss:$8 sps:$4 sm:$0xff]   ;;  %v718_v31 = vld [vmem:[#allocation5 + $0xa4] ss:$8 sps:$4 sm:$0xff]  }
  0x42   :  { %282 = vmatprep.subr.bf16.mxu0 %v697_v6  ;;  %v748_v32 = vld [vmem:[#allocation7 + $0x44] ss:$8 sps:$4 sm:$0xff]   ;;  %v720_v33 = vld [vmem:[#allocation5 + $0xa0] ss:$8 sps:$4 sm:$0xff]   ;;  %v721_v35 = vld [vmem:[#allocation5 + $0xb4] ss:$8 sps:$4 sm:$0xff]  }
  0x43   :  { %544 = vmatpush1.bf16.msra.mxu1 %v741_v22  ;;  %v750_v34 = vld [vmem:[#allocation7 + $0x40] ss:$8 sps:$4 sm:$0xff]   ;;  %v751_v36 = vld [vmem:[#allocation7 + $0x54] ss:$8 sps:$4 sm:$0xff]   ;;  %v723_v37 = vld [vmem:[#allocation5 + $0xb0] ss:$8 sps:$4 sm:$0xff]  }
  0x44   :  { %545 = vmatprep.subr.bf16.mxu1 %v742_v24  ;;  %v753_v38 = vld [vmem:[#allocation7 + $0x50] ss:$8 sps:$4 sm:$0xff]   ;;  %v724_v39 = vld [vmem:[#allocation5 + $0xc4] ss:$8 sps:$4 sm:$0xff]   ;;  %v726_v41 = vld [vmem:[#allocation5 + $0xc0] ss:$8 sps:$4 sm:$0xff]  }
  0x45   :  { %283 = vmatpush1.bf16.msra.mxu0 %v699_v7  ;;  %v754_v40 = vld [vmem:[#allocation7 + $0x64] ss:$8 sps:$4 sm:$0xff]   ;;  %v756_v42 = vld [vmem:[#allocation7 + $0x60] ss:$8 sps:$4 sm:$0xff]   ;;  %v727_v43 = vld [vmem:[#allocation5 + $0xd4] ss:$8 sps:$4 sm:$0xff]  }
  0x46   :  { %284 = vmatprep.subr.bf16.mxu0 %v700_v8  ;;  %v757_v44 = vld [vmem:[#allocation7 + $0x74] ss:$8 sps:$4 sm:$0xff]   ;;  %v729_v45 = vld [vmem:[#allocation5 + $0xd0] ss:$8 sps:$4 sm:$0xff]   ;;  %v730_v47 = vld [vmem:[#allocation5 + $0xe4] ss:$8 sps:$4 sm:$0xff]  }
  0x47   :  { %546 = vmatpush1.bf16.msra.mxu1 %v744_v26  ;;  %v759_v46 = vld [vmem:[#allocation7 + $0x70] ss:$8 sps:$4 sm:$0xff]   ;;  %v760_v48 = vld [vmem:[#allocation7 + $0x84] ss:$8 sps:$4 sm:$0xff]   ;;  %v732_v49 = vld [vmem:[#allocation5 + $0xe0] ss:$8 sps:$4 sm:$0xff]  }
  0x48   :  { %547 = vmatprep.subr.bf16.mxu1 %v745_v28  ;;  %v762_v50 = vld [vmem:[#allocation7 + $0x80] ss:$8 sps:$4 sm:$0xff]   ;;  %v733_v51 = vld [vmem:[#allocation5 + $0xf4] ss:$8 sps:$4 sm:$0xff]   ;;  %v735_v53 = vld [vmem:[#allocation5 + $0xf0] ss:$8 sps:$4 sm:$0xff]  }
  0x49   :  { %285 = vmatpush1.bf16.msra.mxu0 %v702_v9  ;;  %v763_v52 = vld [vmem:[#allocation7 + $0x94] ss:$8 sps:$4 sm:$0xff]   ;;  %v64_v55 = vld [vmem:[#allocation2 + $0x10] sm:$0xff]  ;;  %v765_v56 = vld [vmem:[#allocation7 + $0x90] ss:$8 sps:$4 sm:$0xff]   ;;  %s603_s9 = sshll.u32 %s885_s8, 4  ;;  %s604_s9 = int_to_ptr.vmem [resolvable:$true] %s603_s9 }
  0x4a   :  { %286 = vmatprep.subr.bf16.mxu0 %v703_v10  ;;  %v67_v57 = vld [vmem:[#allocation2 + $0x28] sm:$0xff]  ;;  %v766_v58 = vld [vmem:[#allocation7 + $0xa4] ss:$8 sps:$4 sm:$0xff]   ;;  %v68_v59 = vpack.c.bf16 %v64_v55, %v62_v54  ;;  %v768_v61 = vld [vmem:[#allocation7 + $0xa0] ss:$8 sps:$4 sm:$0xff]   ;;  %v106_v10 = vlaneseq  ;;  %p855_p11 = scmp.lt.s32.totalorder %s604_s9, %s604_s9 }
  0x4b   :  { %548 = vmatpush1.bf16.msra.mxu1 %v747_v30  ;;  %v71_v60 = vpack.c.bf16 %v67_v57, %v67_v57  ;;  %v769_v62 = vld [vmem:[#allocation7 + $0xb4] ss:$8 sps:$4 sm:$0xff]   ;;  %v771_v0 = vld [vmem:[#allocation7 + $0xb0] ss:$8 sps:$4 sm:$0xff]   ;;  %v772_v1 = vld [vmem:[#allocation7 + $0xc4] ss:$8 sps:$4 sm:$0xff]  }
  0x4c   :  { %549 = vmatprep.subr.bf16.mxu1 %v748_v32  ;;  %v66_v63 = vld [vmem:[#allocation2 + $0x20] sm:$0xff]  ;;  %v774_v3 = vld [vmem:[#allocation7 + $0xc0] ss:$8 sps:$4 sm:$0xff]   ;;  %v778_v6 = vld [vmem:[#allocation7 + $0xe4] ss:$8 sps:$4 sm:$0xff]  }
  0x4d   :  { %287 = vmatpush1.bf16.msra.mxu0 %v705_v11  ;;  %v70_v2 = vpack.c.bf16 %v66_v63, %v66_v63  ;;  %v775_v4 = vld [vmem:[#allocation7 + $0xd4] ss:$8 sps:$4 sm:$0xff]   ;;  %v777_v5 = vld [vmem:[#allocation7 + $0xd0] ss:$8 sps:$4 sm:$0xff]   ;;  %v780_v7 = vld [vmem:[#allocation7 + $0xe0] ss:$8 sps:$4 sm:$0xff]  }
  0x4e   :  { %288 = vmatprep.subr.bf16.mxu0 %v706_v12  ;;  %v781_v8 = vld [vmem:[#allocation7 + $0xf4] ss:$8 sps:$4 sm:$0xff]   ;;  %v783_v9 = vld [vmem:[#allocation7 + $0xf0] ss:$8 sps:$4 sm:$0xff]   ;;  %v107_v11 = vshrl.u32 %v106_v10, 7 }
  0x4f   :  { %550 = vmatpush1.bf16.msra.mxu1 %v750_v34  ;;  %v104_v13 = vld [vmem:[%s984_s2] sm:$0x3] }
  0x50   :  { %551 = vmatprep.subr.bf16.mxu1 %v751_v36  ;;  %v108_v12 = vsub.s32 0, %v107_v11  ;;  %v112_v14 = vsub.s32 1, %v107_v11 }
  0x51   :  { %289 = vmatpush1.bf16.msra.mxu0 %v708_v15 }
  0x52   :  { %290 = vmatprep.subr.bf16.mxu0 %v709_v17  ;;  %v109_v15 = vrot.slane %v104_v13, %v108_v12  ;;  %v113_v16 = vrot.slane %v104_v13, %v112_v14 }
  0x53   :  { %552 = vmatpush1.bf16.msra.mxu1 %v753_v38 }
  0x54   :  { %553 = vmatprep.subr.bf16.mxu1 %v754_v40 }
  0x55   :  { %291 = vmatpush1.bf16.msra.mxu0 %v711_v21 }
  0x56   :  { %292 = vmatprep.subr.bf16.mxu0 %v712_v23 }
  0x57   :  { %554 = vmatpush1.bf16.msra.mxu1 %v756_v42 }
  0x58   :  { %555 = vmatprep.subr.bf16.mxu1 %v757_v44 }
  0x59   :  { %293 = vmatpush1.bf16.msra.mxu0 %v714_v25 }
  0x5a   :  { %294 = vmatprep.subr.bf16.mxu0 %v715_v27 }
  0x5b   :  { %556 = vmatpush1.bf16.msra.mxu1 %v759_v46 }
  0x5c   :  { %557 = vmatprep.subr.bf16.mxu1 %v760_v48 }
  0x5d   :  { %295 = vmatpush1.bf16.msra.mxu0 %v717_v29 }
  0x5e   :  { %296 = vmatprep.subr.bf16.mxu0 %v718_v31 }
  0x5f   :  { %558 = vmatpush1.bf16.msra.mxu1 %v762_v50 }
  0x60   :  { %559 = vmatprep.subr.bf16.mxu1 %v763_v52 }
  0x61   :  { %297 = vmatpush1.bf16.msra.mxu0 %v720_v33 }
  0x62   :  { %298 = vmatprep.subr.bf16.mxu0 %v721_v35 }
  0x63   :  { %560 = vmatpush1.bf16.msra.mxu1 %v765_v56 }
  0x64   :  { %561 = vmatprep.subr.bf16.mxu1 %v766_v58 }
  0x65   :  { %299 = vmatpush1.bf16.msra.mxu0 %v723_v37 }
  0x66   :  { %300 = vmatprep.subr.bf16.mxu0 %v724_v39 }
  0x67   :  { %562 = vmatpush1.bf16.msra.mxu1 %v768_v61 }
  0x68   :  { %563 = vmatprep.subr.bf16.mxu1 %v769_v62 }
  0x69   :  { %301 = vmatpush1.bf16.msra.mxu0 %v726_v41  ;;  %v369_v41 = vld [vmem:[%s986_s4] sm:$0x3]  ;;  %s850_s4 = scalar_lea.vmem %s604_s9, 768 }
  0x6a   :  { %302 = vmatprep.subr.bf16.mxu0 %v727_v43  ;;  %v374_v42 = vrot.slane %v369_v41, %v108_v12  ;;  %v378_v43 = vrot.slane %v369_v41, %v112_v14  ;;  %p851_p10 = scmp.ne.s32.totalorder %s604_s9, %s850_s4  ;;  %p856_p12 = scmp.lt.s32.totalorder %s850_s4, %s850_s4 }
  0x6b   :  { %564 = vmatpush1.bf16.msra.mxu1 %v771_v0 }
  0x6c   :  { %565 = vmatprep.subr.bf16.mxu1 %v772_v1  ;;  %p857_p13 = por %p856_p12, %p855_p11 }
  0x6d   :  { %303 = vmatpush1.bf16.msra.mxu0 %v729_v45 }
  0x6e   :  { %304 = vmatprep.subr.bf16.mxu0 %v730_v47  ;;  %p858_p0 = pnand %p857_p13, %p851_p10 }
  0x6f   :  { %566 = vmatpush1.bf16.msra.mxu1 %v774_v3 }
  0x70   :  { %567 = vmatprep.subr.bf16.mxu1 %v775_v4 }
  0x71   :  { %305 = vmatpush1.bf16.msra.mxu0 %v732_v49 }
  0x72   :  { %306 = vmatprep.subr.bf16.mxu0 %v733_v51 }
  0x73   :  { %568 = vmatpush1.bf16.msra.mxu1 %v777_v5 }
  0x74   :  { %569 = vmatprep.subr.bf16.mxu1 %v778_v6 }
  0x75   :  { %307 = vmatpush1.bf16.msra.mxu0 %v735_v53 }
  0x77   :  { %570 = vmatpush1.bf16.msra.mxu1 %v780_v7 }
  0x78   :  { %309 = vmatmul.mubr.bf16.vlgmr.msra.gmra.mrb[0].mxu0 %v68_v59  ;;  %571 = vmatprep.subr.bf16.mxu1 %v781_v8 }
  0x79   :  { %318 = vmatprep.mubr.bf16.mxu0 %v71_v60 }
  0x7b   :  { %572 = vmatpush1.bf16.msra.mxu1 %v783_v9 }
  0x80   :  { %319 = vmatmul.mubr.bf16.gmra.mrb[4].mxu0 %v70_v2 }
 0x14b   :  { %v310_v17 = vpop.f32.mrb[0].mxu0 }
 0x14c   :  { %v311_v18 = vadd.f32 %v310_v17, %v109_v15  ;;  %v312_v19 = vpop.f32.mrb[1].mxu0 }
 0x14d   :  { %v313_v20 = vadd.f32 %v312_v19, %v113_v16  ;;  %v314_v21 = vpop.f32.mrb[2].mxu0 }
 0x14e   :  { %v315_v22 = vadd.f32 %v314_v21, %v109_v15  ;;  %v316_v23 = vpop.f32.mrb[3].mxu0  ;;  %v327_v25 = vmax.f32 %v311_v18, 0.0 }
 0x14f   :  { %v317_v24 = vadd.f32 %v316_v23, %v113_v16  ;;  %v328_v27 = vmax.f32 %v313_v20, 0.0 }
 0x150   :  { %v329_v26 = vmax.f32 %v315_v22, 0.0 }
 0x151   :  { %v330_v28 = vmax.f32 %v317_v24, 0.0 }
 0x152   :  { %v333_v29 = vpack.c.bf16 %v329_v26, %v327_v25 }
 0x153   :  { %v320_v30 = vpop.f32.mrb[4].mxu0  ;;  %v334_v31 = vpack.c.bf16 %v330_v28, %v328_v27 }
 0x154   :  { %v321_v32 = vadd.f32 %v320_v30, %v109_v15  ;;  %v322_v33 = vpop.f32.mrb[5].mxu0 }
 0x155   :  { %v323_v34 = vadd.f32 %v322_v33, %v113_v16  ;;  %v324_v35 = vpop.f32.mrb[6].mxu0  ;;  %573 = vmatprep.mubr.bf16.mxu1 %v334_v31 }
 0x156   :  { %v325_v36 = vpop.f32.mrb[7].mxu0  ;;  %574 = vmatmul.mubr.bf16.vlgmr.msra.gmra.mrb[0].mxu1 %v333_v29  ;;  %v331_v38 = vmax.f32 %v321_v32, 0.0 }
 0x157   :  { %v332_v37 = vmax.f32 %v323_v34, 0.0 }
 0x158   :  { %v335_v40 = vpack.c.bf16 %v331_v38, %v331_v38 }
 0x159   :  { %v336_v39 = vpack.c.bf16 %v332_v37, %v332_v37 }
 0x15b   :  { %583 = vmatprep.mubr.bf16.mxu1 %v336_v39 }
 0x15e   :  { %584 = vmatmul.mubr.bf16.gmra.mrb[4].mxu1 %v335_v40 }
 0x229   :  { %v575_v44 = vpop.f32.mrb[0].mxu1 }
 0x22a   :  { %v576_v45 = vadd.f32 %v575_v44, %v374_v42  ;;  %v577_v46 = vpop.f32.mrb[1].mxu1 }
 0x22b   :  { %v578_v47 = vadd.f32 %v577_v46, %v378_v43  ;;  %v579_v48 = vpop.f32.mrb[2].mxu1 }
 0x22c   :  { %592 = vst [vmem:[#allocation8] sm:$0xff] %v576_v45  ;;  %v580_v49 = vadd.f32 %v579_v48, %v374_v42  ;;  %v581_v50 = vpop.f32.mrb[3].mxu1 }
 0x22d   :  { %593 = vst [vmem:[#allocation8 + $0x8] sm:$0xff] %v578_v47  ;;  %v582_v51 = vadd.f32 %v581_v50, %v378_v43 }
 0x22e   :  { %594 = vst [vmem:[#allocation8 + $0x10] sm:$0xff] %v580_v49 }
 0x22f   :  { %595 = vst [vmem:[#allocation8 + $0x18] sm:$0xff] %v582_v51 }
 0x231   :  { %v585_v52 = vpop.f32.mrb[4].mxu1 }
 0x232   :  { %v586_v53 = vadd.f32 %v585_v52, %v374_v42  ;;  %v587_v54 = vpop.f32.mrb[5].mxu1 }
 0x233   :  { %v588_v55 = vadd.f32 %v587_v54, %v378_v43  ;;  %v589_v56 = vpop.f32.mrb[6].mxu1 }
 0x234   :  { %596 = vst [vmem:[#allocation8 + $0x20] sm:$0xff] %v586_v53  ;;  %v590_v57 = vpop.f32.mrb[7].mxu1 }
 0x235   :  { %597 = vst [vmem:[#allocation8 + $0x28] sm:$0xff] %v588_v55 }
 0x236   :  { %861 = shalt.err (!%p858_p0)
}
 0x237   :  { %s862_s12 = scalar_lea.hbm %s987_s5, 768 }
 0x238   :  { %p863_p1 = scmp.ne.s32.totalorder %s987_s5, %s862_s12  ;;  %p866_p2 = scmp.lt.u32.totalorder %s862_s12, %s987_s5 }
 0x23a   :  { %p868_p3 = pnand %p866_p2, %p863_p1 }
 0x23c   :  { %871 = shalt.err (!%p868_p3)
}
 0x23d   :  { %609 = dma.vmem_to_hbm [thread:$0]  %s604_s9, 768, %s987_s5, [#allocation4], %s882_s1, %s882_s1, %s883_s17  }
 0x23e   :  { %876 = dma.done.wait [#allocation4], 768  }
 0x23f   :  { %877 = vsyncadd [#allocation4], 4294966528 }
 0x240   :  { %613 = vsyncpa [#allocation3], 1 }
 0x241   :  { %614 = vsyncpa [#allocation6], 1 }
 0x242   :  { %615 = vsyncpa [#allocation4], 1 }

</bundles_post_ra>
